<compile_context>
chip_gen: v5e
topology: v5e:2x2
jax: 0.10.0
libtpu: 0.0.40
codegen_flags: <defaults>
</compile_context>

<pallas_src>
import math
import functools

import jax
import jax.numpy as jnp
from jax.experimental import pallas as pl
from jax.experimental.pallas import tpu as pltpu


# ------------------------------ small utilities ------------------------------

def _device_kind():
    try:
        return jax.devices()[0].device_kind.lower()
    except Exception:
        return ""


def _pick_tile(n, target):
    """Largest multiple-of-8 divisor of n that is <= min(n, target)."""
    t = min(n, target)
    while n % t:
        t -= 8
    return t


# ----------------------------- in-kernel helpers -----------------------------

def _layernorm(x, gamma, beta, eps=1e-5):
    # nn.LayerNorm(d_model): normalize over last dim, biased variance, f32.
    mean = jnp.mean(x, axis=-1, keepdims=True)
    var = jnp.mean((x - mean) ** 2, axis=-1, keepdims=True)
    return (x - mean) * jax.lax.rsqrt(var + eps) * gamma + beta


def _flash_attention(x_q, k_ref, v_ref, wq, wo, *, num_heads, kv_tile,
                     n_kv_tiles, causal, q_offset):
    """Online-softmax attention for one query tile.

    x_q:          (TQ, D) f32 query-side activations (residual rows).
    k_ref, v_ref: VMEM refs of shape (Skv, D), bf16, already projected.
    wq, wo:       (D, D) bf16 projection weights (values, loaded once).
    n_kv_tiles:   number of KV tiles to visit; traced scalar for the causal
                  skip, Python int for cross-attention.
    """
    TQ, D = x_q.shape
    H = num_heads
    dh = D // H
    scale = 1.0 / math.sqrt(dh)

    # Q projection on the MXU; fold the 1/sqrt(dh) scale into Q here
    # (O(TQ*D) VALU work instead of O(H*TQ*Skv) on the score tensor).
    q = jnp.dot(x_q.astype(jnp.bfloat16), wq, preferred_element_type=jnp.float32)
    # NOTE: dh < 128 makes the per-head contractions lane-sparse on the MXU;
    # keep dh >= 128 in the model config if possible (review item).
    q = (q * scale).astype(jnp.bfloat16).reshape(TQ, H, dh)

    if causal:
        rows = q_offset + jax.lax.broadcasted_iota(jnp.int32, (TQ, kv_tile), 0)
        cols = jax.lax.broadcasted_iota(jnp.int32, (TQ, kv_tile), 1)

    def body(t, carry):
        m, l, acc = carry
        off = pl.multiple_of(t * kv_tile, kv_tile)
        k = k_ref[pl.ds(off, kv_tile), :].reshape(kv_tile, H, dh)
        v = v_ref[pl.ds(off, kv_tile), :].reshape(kv_tile, H, dh)
        # One batched contraction over heads; no per-head slices.
        s = jnp.einsum("qhd,khd->hqk", q, k,
                       preferred_element_type=jnp.float32)       # (H, TQ, kvt)
        if causal:
            # Large finite negative (not -inf) so exp() cleanly underflows.
            s = jnp.where((rows >= off + cols)[None, :, :], s, -1e30)
        m_new = jnp.maximum(m, jnp.max(s, axis=-1, keepdims=True))
        alpha = jnp.exp(m - m_new)
        p = jnp.exp(s - m_new)
        l_new = alpha * l + jnp.sum(p, axis=-1, keepdims=True)
        acc_new = alpha * acc + jnp.einsum(
            "hqk,khd->hqd", p.astype(jnp.bfloat16), v,
            preferred_element_type=jnp.float32)
        return m_new, l_new, acc_new

    m0 = jnp.full((H, TQ, 1), -1e30, jnp.float32)
    l0 = jnp.zeros((H, TQ, 1), jnp.float32)
    a0 = jnp.zeros((H, TQ, dh), jnp.float32)
    _, l, acc = jax.lax.fori_loop(0, n_kv_tiles, body, (m0, l0, a0))

    acc = acc * pl.reciprocal(l, approx=True)                     # EUP, ~free
    o = jnp.transpose(acc, (1, 0, 2)).reshape(TQ, D).astype(jnp.bfloat16)
    return jnp.dot(o, wo, preferred_element_type=jnp.float32)     # (TQ, D) f32


# ------------------------- K/V projection pallas_call -------------------------

def _kv_project_kernel(x_ref, wk_ref, wv_ref, k_ref, v_ref):
    x = x_ref[...]                                                # (TS, D) bf16
    k_ref[...] = jnp.dot(x, wk_ref[...],
                         preferred_element_type=jnp.float32).astype(jnp.bfloat16)
    v_ref[...] = jnp.dot(x, wv_ref[...],
                         preferred_element_type=jnp.float32).astype(jnp.bfloat16)


def _kv_project(x_bf16, wk_bf16, wv_bf16, *, s_tile, vmem_limit):
    """x (B,S,D) bf16 @ {wk,wv} (D,D) bf16 -> K,V (B,S,D) bf16, hoisted once."""
    B, S, D = x_bf16.shape

    def seq_spec():
        return pl.BlockSpec((None, s_tile, D), lambda b, si: (b, si, 0))

    def weight_spec():
        return pl.BlockSpec((D, D), lambda b, si: (0, 0),
                            pipeline_mode=pl.Buffered(1))

    return pl.pallas_call(
        _kv_project_kernel,
        out_shape=(jax.ShapeDtypeStruct((B, S, D), jnp.bfloat16),
                   jax.ShapeDtypeStruct((B, S, D), jnp.bfloat16)),
        grid_spec=pltpu.PrefetchScalarGridSpec(
            num_scalar_prefetch=0,
            grid=(B, S // s_tile),
            in_specs=[seq_spec(), weight_spec(), weight_spec()],
            out_specs=(seq_spec(), seq_spec()),
        ),
        compiler_params=pltpu.CompilerParams(
            dimension_semantics=("parallel", "parallel"),
            vmem_limit_bytes=vmem_limit,
        ),
    )(x_bf16, wk_bf16, wv_bf16)


# ------------------------------- fused layer kernel ---------------------------

def decoder_layer_kernel(dec_q_ref, k_self_ref, v_self_ref,
                         k_cross_ref, v_cross_ref,
                         wq1, wo1, g1, be1,
                         wq2, wo2, g2, be2,
                         w1, b1, w2, b2, g3, be3,
                         out_ref, *, num_heads, q_tile, kv_tile_cross):
    qi = pl.program_id(1)
    x = dec_q_ref[...]                                            # (TQ, D) f32

    # masked self-attention + add&norm.  Causal skip: only KV tiles 0..qi are
    # visited (kv_tile == q_tile); the mask only bites inside the diag tile.
    att1 = _flash_attention(
        x, k_self_ref, v_self_ref, wq1[...], wo1[...],
        num_heads=num_heads, kv_tile=q_tile, n_kv_tiles=qi + 1,
        causal=True, q_offset=qi * q_tile)
    x1 = _layernorm(x + att1, g1[...], be1[...])

    # cross-attention (Q from decoder, K/V from encoder) + add&norm
    # TODO(synk): padding_mask / enc_padding_mask are None in the reference
    # forward call and are not threaded through this kernel.
    n_cross = k_cross_ref.shape[0] // kv_tile_cross
    att2 = _flash_attention(
        x1, k_cross_ref, v_cross_ref, wq2[...], wo2[...],
        num_heads=num_heads, kv_tile=kv_tile_cross, n_kv_tiles=n_cross,
        causal=False, q_offset=0)
    x2 = _layernorm(x1 + att2, g2[...], be2[...])

    # feed-forward + add&norm.  w1/w2 are bf16 and single-buffered in VMEM;
    # the (TQ, 4D) f32 activation is small (~2 MiB at TQ=128, D=1024) so it is
    # not chunked (the removed d_ff loop only bounded that activation anyway).
    # TODO(synk): for very large D on v7x, stream w1/w2 chunks from HBM
    # (grid reduction axis or emit_pipeline) instead of keeping them resident.
    h = jnp.dot(x2.astype(jnp.bfloat16), w1[...],
                preferred_element_type=jnp.float32) + b1[...]
    h = jnp.maximum(h, 0.0).astype(jnp.bfloat16)
    ff = jnp.dot(h, w2[...], preferred_element_type=jnp.float32) + b2[...]
    out_ref[...] = _layernorm(x2 + ff, g3[...], be3[...])


# ---------------------------------- wrapper -----------------------------------

def decoder_layer(dec, enc, params, num_heads, *, q_tile=None):
    B, S, D = dec.shape
    Be, Se, De = enc.shape
    assert Be == B and De == D
    assert D % 128 == 0, "d_model must be lane-dense (multiple of 128)"
    assert S % 8 == 0 and Se % 8 == 0
    assert D % num_heads == 0

    kind = _device_kind()
    # v5e / v6e have 128 MiB VMEM -> give the compiler headroom; v7x has 64 MiB.
    if "v5" in kind or "v6" in kind:
        vmem_limit = 96 * 1024 * 1024
    else:
        vmem_limit = 48 * 1024 * 1024
    if q_tile is None:
        q_tile = _pick_tile(S, 256 if "v6" in kind else 128)
    assert S % q_tile == 0
    kv_tile_cross = _pick_tile(Se, 256)

    (wq1, wk1, wv1, wo1, g1, be1,
     wq2, wk2, wv2, wo2, g2, be2,
     w1, b1, w2, b2, g3, be3) = params
    bf = lambda w: w.astype(jnp.bfloat16)
    f32 = lambda w: w.astype(jnp.float32)

    # --- hoisted K/V projections (once per batch, bf16 results) ---------------
    k_self, v_self = _kv_project(dec.astype(jnp.bfloat16), bf(wk1), bf(wv1),
                                 s_tile=_pick_tile(S, 256), vmem_limit=vmem_limit)
    k_cross, v_cross = _kv_project(enc.astype(jnp.bfloat16), bf(wk2), bf(wv2),
                                   s_tile=_pick_tile(Se, 256), vmem_limit=vmem_limit)

    # bf16 for everything that feeds the MXU; f32 for biases / layernorm affine.
    kernel_params = [bf(wq1), bf(wo1), f32(g1), f32(be1),
                     bf(wq2), bf(wo2), f32(g2), f32(be2),
                     bf(w1), f32(b1), bf(w2), f32(b2), f32(g3), f32(be3)]

    def wspec(shape):
        nd = len(shape)
        # Constant index_map -> single-buffer the weights (halves their VMEM).
        return pl.BlockSpec(shape, lambda b, qi, _nd=nd: (0,) * _nd,
                            pipeline_mode=pl.Buffered(1))

    in_specs = [
        pl.BlockSpec((None, q_tile, D), lambda b, qi: (b, qi, 0)),  # Q/residual
        pl.BlockSpec((None, S, D), lambda b, qi: (b, 0, 0)),        # K self (bf16)
        pl.BlockSpec((None, S, D), lambda b, qi: (b, 0, 0)),        # V self (bf16)
        pl.BlockSpec((None, Se, D), lambda b, qi: (b, 0, 0)),       # K cross (bf16)
        pl.BlockSpec((None, Se, D), lambda b, qi: (b, 0, 0)),       # V cross (bf16)
    ] + [wspec(p.shape) for p in kernel_params]

    kernel = functools.partial(decoder_layer_kernel,
                               num_heads=num_heads, q_tile=q_tile,
                               kv_tile_cross=kv_tile_cross)

    return pl.pallas_call(
        kernel,
        out_shape=jax.ShapeDtypeStruct((B, S, D), jnp.float32),
        grid_spec=pltpu.PrefetchScalarGridSpec(
            num_scalar_prefetch=0,
            grid=(B, S // q_tile),
            in_specs=in_specs,
            out_specs=pl.BlockSpec((None, q_tile, D), lambda b, qi: (b, qi, 0)),
        ),
        compiler_params=pltpu.CompilerParams(
            dimension_semantics=("parallel", "parallel"),
            vmem_limit_bytes=vmem_limit,
        ),
    )(dec, k_self, v_self, k_cross, v_cross, *kernel_params)


# ------------------------- parameter initialization ---------------------------

def xavier_uniform(key, shape):
    fan_in, fan_out = shape
    bound = math.sqrt(6.0 / (fan_in + fan_out))
    return jax.random.uniform(key, shape, jnp.float32, -bound, bound)


def make_params(key, d_model):
    d_ff = 4 * d_model
    ks = jax.random.split(key, 10)
    wq1, wk1, wv1, wo1 = (xavier_uniform(ks[i], (d_model, d_model)) for i in range(4))
    wq2, wk2, wv2, wo2 = (xavier_uniform(ks[4 + i], (d_model, d_model)) for i in range(4))
    w1 = xavier_uniform(ks[8], (d_model, d_ff))
    b1 = jnp.zeros((1, d_ff), jnp.float32)
    w2 = xavier_uniform(ks[9], (d_ff, d_model))
    b2 = jnp.zeros((1, d_model), jnp.float32)
    g = jnp.ones((1, d_model), jnp.float32)
    be = jnp.zeros((1, d_model), jnp.float32)
    return [wq1, wk1, wv1, wo1, g, be,
            wq2, wk2, wv2, wo2, g, be,
            w1, b1, w2, b2, g, be]


# ----------------------------- pure-JAX reference ------------------------------

def ref_decoder_layer(dec, enc, params, num_heads):
    (wq1, wk1, wv1, wo1, g1, be1,
     wq2, wk2, wv2, wo2, g2, be2,
     w1, b1, w2, b2, g3, be3) = params

    def ln(x, g, b, eps=1e-5):
        m = jnp.mean(x, axis=-1, keepdims=True)
        v = jnp.mean((x - m) ** 2, axis=-1, keepdims=True)
        return (x - m) / jnp.sqrt(v + eps) * g + b

    def mha(q_in, kv_in, wq, wk, wv, wo, causal):
        B, S, D = q_in.shape
        Skv = kv_in.shape[1]
        dh = D // num_heads
        Q = (q_in @ wq).reshape(B, S, num_heads, dh).transpose(0, 2, 1, 3)
        K = (kv_in @ wk).reshape(B, Skv, num_heads, dh).transpose(0, 2, 1, 3)
        V = (kv_in @ wv).reshape(B, Skv, num_heads, dh).transpose(0, 2, 1, 3)
        s = jnp.einsum("bhqd,bhkd->bhqk", Q, K) / math.sqrt(dh)
        if causal:
            mask = jnp.tril(jnp.ones((S, Skv)))
            s = jnp.where(mask == 0, -jnp.inf, s)
        p = jax.nn.softmax(s, axis=-1)
        o = jnp.einsum("bhqk,bhkd->bhqd", p, V).transpose(0, 2, 1, 3).reshape(B, S, D)
        return o @ wo

    a1 = mha(dec, dec, wq1, wk1, wv1, wo1, True)
    x1 = ln(dec + a1, g1, be1)
    a2 = mha(x1, enc, wq2, wk2, wv2, wo2, False)
    x2 = ln(x1 + a2, g2, be2)
    ff = jnp.maximum(x2 @ w1 + b1, 0.0) @ w2 + b2
    return ln(x2 + ff, g3, be3)


# ------------------------------------- main ------------------------------------

if __name__ == "__main__":
    B, S, Se, H = 2, 8, 8, 4
    D = 128   # lane-dense d_model (multiple of 128)

    key = jax.random.PRNGKey(0)
    k_dec, k_enc, k_par = jax.random.split(key, 3)
    decoder_input = jax.random.normal(k_dec, (B, S, D), jnp.float32)
    encoder_output = jax.random.normal(k_enc, (B, Se, D), jnp.float32)
    params = make_params(k_par, D)

    out = decoder_layer(decoder_input, encoder_output, params, H)
    out = jax.block_until_ready(out)

    ref = ref_decoder_layer(decoder_input, encoder_output, params, H)
    assert out.shape == (B, S, D)
    max_err = float(jnp.max(jnp.abs(out - ref)))
    # bf16 matmul inputs + approx reciprocal => compare against the fp32
    # reference with bf16-appropriate tolerance.
    assert jnp.allclose(out, ref, atol=5e-2, rtol=5e-2), \
        f"mismatch vs JAX reference (max |err| = {max_err})"

    print("KERNEL_OK")
</pallas_src>

<mosaic_0001>
module attributes {stable_mosaic.version = 11 : i64} {
  func.func @_kv_project_kernel(%arg0: i32, %arg1: i32, %arg2: memref<1x8x128xbf16, #tpu.memory_space<vmem>>, %arg3: memref<128x128xbf16, #tpu.memory_space<vmem>>, %arg4: memref<128x128xbf16, #tpu.memory_space<vmem>>, %arg5: memref<1x8x128xbf16, #tpu.memory_space<vmem>>, %arg6: memref<1x8x128xbf16, #tpu.memory_space<vmem>>) attributes {dimension_semantics = [#tpu.dimension_semantics<parallel>, #tpu.dimension_semantics<parallel>], iteration_bounds = array<i64: 2, 1>, scalar_prefetch = 0 : i64, scratch_operands = 0 : i64, tpu.core_type = #tpu.core_type<tc>, window_params = [{transform_indices = @transform_0, window_bounds = array<i64: 1, 8, 128>}, {pipeline_mode = #tpu.pipeline_mode<synchronous>, transform_indices = @transform_1, window_bounds = array<i64: 128, 128>}, {pipeline_mode = #tpu.pipeline_mode<synchronous>, transform_indices = @transform_2, window_bounds = array<i64: 128, 128>}, {transform_indices = @transform_3, window_bounds = array<i64: 1, 8, 128>}, {transform_indices = @transform_4, window_bounds = array<i64: 1, 8, 128>}]} {
    %c0 = arith.constant 0 : index
    %c0_0 = arith.constant 0 : index
    %c0_1 = arith.constant 0 : index
    %0 = vector.load %arg2[%c0, %c0_0, %c0_1] : memref<1x8x128xbf16, #tpu.memory_space<vmem>>, vector<1x8x128xbf16>
    %1 = vector.shape_cast %0 : vector<1x8x128xbf16> to vector<8x128xbf16>
    %c0_2 = arith.constant 0 : index
    %c0_3 = arith.constant 0 : index
    %2 = vector.load %arg3[%c0_2, %c0_3] : memref<128x128xbf16, #tpu.memory_space<vmem>>, vector<128x128xbf16>
    %cst = arith.constant dense<0.000000e+00> : vector<8x128xf32>
    %3 = tpu.matmul %1, %2, %cst {dimension_numbers = #tpu.dot_dimension_numbers<[1], [0], [0], [1], [0, 0, 1, 1], [], []>} : vector<8x128xbf16>, vector<128x128xbf16>, vector<8x128xf32> -> vector<8x128xf32>
    %4 = arith.truncf %3 : vector<8x128xf32> to vector<8x128xbf16>
    %c0_4 = arith.constant 0 : index
    %c0_5 = arith.constant 0 : index
    %c0_6 = arith.constant 0 : index
    %5 = vector.load %arg5[%c0_4, %c0_5, %c0_6] : memref<1x8x128xbf16, #tpu.memory_space<vmem>>, vector<1x8x128xbf16>
    %6 = vector.shape_cast %5 : vector<1x8x128xbf16> to vector<8x128xbf16>
    %7 = vector.shape_cast %4 : vector<8x128xbf16> to vector<1x8x128xbf16>
    tpu.vector_store %arg5[%c0_4, %c0_5, %c0_6], %7 {strides = array<i32>} : memref<1x8x128xbf16, #tpu.memory_space<vmem>>, vector<1x8x128xbf16>,
    %c0_7 = arith.constant 0 : index
    %c0_8 = arith.constant 0 : index
    %8 = vector.load %arg4[%c0_7, %c0_8] : memref<128x128xbf16, #tpu.memory_space<vmem>>, vector<128x128xbf16>
    %cst_9 = arith.constant dense<0.000000e+00> : vector<8x128xf32>
    %9 = tpu.matmul %1, %8, %cst_9 {dimension_numbers = #tpu.dot_dimension_numbers<[1], [0], [0], [1], [0, 0, 1, 1], [], []>} : vector<8x128xbf16>, vector<128x128xbf16>, vector<8x128xf32> -> vector<8x128xf32>
    %10 = arith.truncf %9 : vector<8x128xf32> to vector<8x128xbf16>
    %c0_10 = arith.constant 0 : index
    %c0_11 = arith.constant 0 : index
    %c0_12 = arith.constant 0 : index
    %11 = vector.load %arg6[%c0_10, %c0_11, %c0_12] : memref<1x8x128xbf16, #tpu.memory_space<vmem>>, vector<1x8x128xbf16>
    %12 = vector.shape_cast %11 : vector<1x8x128xbf16> to vector<8x128xbf16>
    %13 = vector.shape_cast %10 : vector<8x128xbf16> to vector<1x8x128xbf16>
    tpu.vector_store %arg6[%c0_10, %c0_11, %c0_12], %13 {strides = array<i32>} : memref<1x8x128xbf16, #tpu.memory_space<vmem>>, vector<1x8x128xbf16>,
    return
  }
  func.func @transform_0(%arg0: i32, %arg1: i32) -> (i32, i32, i32) {
    %c0_i32 = arith.constant 0 : i32
    %c0_i32_0 = arith.constant 0 : i32
    return %arg0, %arg1, %c0_i32 : i32, i32, i32
  }
  func.func @transform_1(%arg0: i32, %arg1: i32) -> (i32, i32) {
    %c0_i32 = arith.constant 0 : i32
    %c0_i32_0 = arith.constant 0 : i32
    %c0_i32_1 = arith.constant 0 : i32
    return %c0_i32, %c0_i32_0 : i32, i32
  }
  func.func @transform_2(%arg0: i32, %arg1: i32) -> (i32, i32) {
    %c0_i32 = arith.constant 0 : i32
    %c0_i32_0 = arith.constant 0 : i32
    %c0_i32_1 = arith.constant 0 : i32
    return %c0_i32, %c0_i32_0 : i32, i32
  }
  func.func @transform_3(%arg0: i32, %arg1: i32) -> (i32, i32, i32) {
    %c0_i32 = arith.constant 0 : i32
    %c0_i32_0 = arith.constant 0 : i32
    return %arg0, %arg1, %c0_i32 : i32, i32, i32
  }
  func.func @transform_4(%arg0: i32, %arg1: i32) -> (i32, i32, i32) {
    %c0_i32 = arith.constant 0 : i32
    %c0_i32_0 = arith.constant 0 : i32
    return %arg0, %arg1, %c0_i32 : i32, i32, i32
  }
}

</mosaic_0001>

<bundles_post_ra>
// kernel: tpu_custom_call.1
= control target key start
LH: loop header
LB: loop body
LE: loop exit
PB: predicated region body
PF: predicated region fallthrough
CT: control target
= control target key end

     0   :  { %10 = vsyncpa [#allocation3], 0  ;;  %s1213_s0 = inlined_call_operand.hbm [shape: bf16[2,8,128], index: 0, kind: input, shape index: {}]   ;;  %s1214_s1 = inlined_call_operand.hbm [shape: bf16[128,128], index: 1, kind: input, shape index: {}]   ;;  %s1215_s2 = inlined_call_operand.hbm [shape: bf16[128,128], index: 2, kind: input, shape index: {}]   ;;  %s1216_s3 = inlined_call_operand.hbm [shape: bf16[2,8,128], index: 3, kind: output, shape index: {0}]   ;;  %s1217_s4 = inlined_call_operand.hbm [shape: bf16[2,8,128], index: 4, kind: output, shape index: {1}]  }
   0x1   :  { %12 = vsyncpa [#allocation3 + $0x1], 0 }
   0x2   :  { %13 = vsyncpa [#allocation6], 0 }
   0x3   :  { %14 = vsyncpa [#allocation4], 0 }
   0x4   :  { %16 = vsyncpa [#allocation4 + $0x1], 0 }
   0x5   :  { %17 = vsyncpa [#allocation10], 0 }
   0x6   :  { %19 = vsyncpa [#allocation10 + $0x1], 0  ;;  %s1036_s15 = smov 0   ;;  %s1038_s16 = smov 0  }
   0x7   :  { %s1040_s17 = smov 0   ;;  %s1042_s18 = smov 0  }
   0x8   :  { %s1044_s19 = smov 0   ;;  %s1046_s20 = smov 0  }
   0x9 LB: > { %s607_s21 = sadd.s32 4294967295, %s1005_s20   ;;  %p609_p0 = scmp.ge.s32.totalorder %s1005_s20, 1  ;;  %s1005_s20 = sphi %s1046_s20, %s25_s20   ;;  %s1001_s19 = sphi %s1044_s19, %s1227_s19   ;;  %s997_s18 = sphi %s1042_s18, %s1226_s18   ;;  %s993_s17 = sphi %s1040_s17, %s1225_s17   ;;  %s989_s16 = sphi %s1038_s16, %s1224_s16   ;;  %s985_s15 = sphi %s1036_s15, %s1223_s15  }
   0xa   : > { %p1070_p1 = scmp.eq.s32.totalorder %s607_s21, 0  ;;  %p168_p2 = scmp.lt.s32.totalorder %s1005_s20, 3 }
   0xb   : > { %s179_s25 = sshll.u32 %s1214_s1, 4  ;;  %s1007_s27 = smov [#allocation5]   ;;  %s180_s25 = int_to_ptr.hbm [resolvable:$true] %s179_s25 }
   0xc   : > { %p1078_p3 = pnand %p609_p0, %p168_p2  ;;  %s181_s28 = sshll.u32 %s1007_s27, 4  ;;  %s182_s28 = int_to_ptr.vmem [resolvable:$true] %s181_s28 }
   0xd   : > { %p612_p6 = scmp.ge.s32.totalorder %s1005_s20, 2  ;;  %s193_s5 = sshll.u32 %s1215_s2, 4  ;;  %s194_s5 = int_to_ptr.hbm [resolvable:$true] %s193_s5 }
   0xe   : > { %p721_p4 = pneg %p1078_p3  ;;  %s1008_s6 = smov 64  }
   0xf   : > { %s1009_s7 = smov 4   ;;  %s1010_s8 = smov [#allocation7]  }
  0x10   : > { %p722_p5 = pnand %p721_p4, %p1070_p1  ;;  %s195_s9 = sshll.u32 %s1010_s8, 4  ;;  %s196_s9 = int_to_ptr.vmem [resolvable:$true] %s195_s9 }
  0x11   : > { %s37_s10 = sadd.s32 1, %s1001_s19  ;;  %s608_s11 = sadd.s32 4294967294, %s1005_s20  }
  0x12   : > { %724 = dma.hbm_to_vmem [thread:$0]  (!%p722_p5), %s180_s25, 1024, %s182_s28, [#allocation6], %s1008_s6, %s1008_s6, %s1009_s7  }
  0x13   : > { %727 = dma.hbm_to_vmem [thread:$0]  (!%p722_p5), %s194_s5, 1024, %s196_s9, [#allocation6], %s1008_s6, %s1008_s6, %s1009_s7  }
  0x14   : > { %p39_p7 = scmp.ge.s32.totalorder %s37_s10, 2  ;;  %s46_s12 = sadd.s32 1, %s993_s17 }
  0x15   : > { %p53_p8 = scmp.ne.s32.totalorder %s993_s17, %s989_s16  ;;  %p54_p9 = scmp.eq.s32.totalorder %s1005_s20, 0 }
  0x16   : > { %s1229_s10 = smov (%p39_p7, %s37_s10), 0  ;;  %p59_p10 = scmp.ne.s32.totalorder %s989_s16, %s985_s15 }
  0x17   : > { %s41_s13 = ssub.s32 %s1001_s19, %s1229_s10  ;;  %p127_p11 = scmp.eq.s32.totalorder %s607_s21, 1 }
  0x18   : > { %p44_p12 = scmp.eq.s32.totalorder %s41_s13, 0  ;;  %p1106_p13 = por %p1070_p1, %p59_p10 }
  0x19   : > { %p1110_p0 = por %p127_p11, %p53_p8  ;;  %p133_p2 = scmp.eq.s32.totalorder %s608_s11, 1 }
  0x1a   : > { %s1115_s24 = scalar_select %p44_p12, %s993_s17, %s46_s12  }
  0x1b   : > { %p55_p4 = por %p54_p9, %p53_p8  ;;  %p1117_p5 = por %p133_p2, %p59_p10 }
  0x1c   : > { %s209_s27 = sand.u32 1, %s993_s17   ;;  %s614_s21 = sshll.u32 %s1001_s19, 2 }
  0x1d   : > { %p741_p7 = scmp.lt.s32.totalorder %s1005_s20, 2  ;;  %s613_s28 = sshll.u32 %s209_s27, 2 }
  0x1e   : > { %s218_s5 = scalar_lea.hbm %s1213_s0, %s614_s21  ;;  %s213_s7 = scalar_lea.vmem [#allocation2], %s613_s28 }
  0x1f   : > { %s220_s6 = sshll.u32 %s218_s5, 4  ;;  %s222_s8 = sshll.u32 %s213_s7, 4  ;;  %s221_s6 = int_to_ptr.hbm [resolvable:$true] %s220_s6  ;;  %s223_s8 = int_to_ptr.vmem [resolvable:$true] %s222_s8 }
  0x20   : > { %p729_p11 = pnand %p741_p7, %p55_p4  ;;  %s210_s9 = scalar_lea.sflag [#allocation3], %s209_s27 }
  0x21   : > { %231 = sbr.rel (%p1078_p3) target bundleno = 217 (0xd9), region = 32  ;;  %s1130_s11 = sand.u32 (!%p1078_p3), 1, %s989_s16  }
  0x22   : > { %731 = dma.hbm_to_vmem [thread:$0]  (!%p729_p11), %s221_s6, 64, %s223_s8, %s210_s9  }
  0x23   : > { %s1133_s12 = sshll.u32 (!%p1078_p3), %s1130_s11, 2  ;;  %s234_s13 = scalar_lea.sflag (!%p1078_p3), [#allocation3], %s1130_s11 }
  0x24   : > { %s237_s21 = scalar_lea.vmem (!%p1078_p3), [#allocation2], %s1133_s12 }
  0x26   : > { %968 = dma.done.wait (%p1106_p13), %s234_s13, 64  }
  0x27   : > { %970 = vsyncadd (%p1106_p13), %s234_s13, 4294967232 }
  0x28   : > { %972 = dma.done.wait (%p1070_p1), [#allocation6], 2048  }
  0x29   : > { %974 = vsyncadd (%p1070_p1), [#allocation6], 4294965248  ;;  %v698_v0 = vld [vmem:[#allocation5 + $0x38] sm:$0xff]  ;;  %v697_v2 = vld [vmem:[#allocation5 + $0x30] sm:$0xff]  ;;  %s687_s22 = sshll.u32 %s997_s18, 2  ;;  %s270_s5 = scalar_lea.vmem [#allocation8], %s1133_s12 }
  0x2a   : > { %v706_v1 = vld [vmem:[#allocation7 + $0x38] sm:$0xff]  ;;  %343 = vmatpush.bf16.msra.mxu0 %v698_v0  ;;  %v705_v3 = vld [vmem:[#allocation7 + $0x30] sm:$0xff]  ;;  %v696_v4 = vld [vmem:[#allocation5 + $0x28] sm:$0xff]  ;;  %s454_s27 = scalar_lea.hbm %s1216_s3, %s687_s22  ;;  %s469_s30 = scalar_lea.hbm %s1217_s4, %s687_s22 }
  0x2b   : > { %422 = vmatpush.bf16.msra.mxu1 %v706_v1  ;;  %v704_v5 = vld [vmem:[#allocation7 + $0x28] sm:$0xff]  ;;  %v695_v6 = vld [vmem:[#allocation5 + $0x20] sm:$0xff]  ;;  %v694_v8 = vld [vmem:[#allocation5 + $0x18] sm:$0xff]  ;;  %s1155_s6 = sshll.u32 %s270_s5, 4  ;;  %s458_s7 = sshll.u32 %s454_s27, 4  ;;  %s457_s6 = int_to_ptr.vmem [resolvable:$true] %s1155_s6  ;;  %s459_s7 = int_to_ptr.hbm [resolvable:$true] %s458_s7 }
  0x2c   : > { %v703_v7 = vld [vmem:[#allocation7 + $0x20] sm:$0xff]  ;;  %v702_v9 = vld [vmem:[#allocation7 + $0x18] sm:$0xff]  ;;  %v693_v10 = vld [vmem:[#allocation5 + $0x10] sm:$0xff]  ;;  %s277_s8 = scalar_lea.vmem [#allocation9], %s1133_s12  ;;  %s473_s13 = sshll.u32 %s469_s30, 4  ;;  %s1162_s13 = int_to_ptr.hbm [resolvable:$true] %s473_s13 }
  0x2d   : > { %v701_v11 = vld [vmem:[#allocation7 + $0x10] sm:$0xff]  ;;  %v692_v12 = vld [vmem:[#allocation5 + $0x8] sm:$0xff]  ;;  %v691_v14 = vld [vmem:[#allocation5] sm:$0xff]  ;;  %s1158_s9 = sshll.u32 %s277_s8, 4  ;;  %s438_s18 = scalar_lea.sflag [#allocation4], %s1130_s11  ;;  %s472_s9 = int_to_ptr.vmem [resolvable:$true] %s1158_s9 }
  0x2e   : > { %344 = vmatpush.bf16.msra.mxu0 %v697_v2  ;;  %v700_v13 = vld [vmem:[#allocation7 + $0x8] sm:$0xff]  ;;  %v699_v15 = vld [vmem:[#allocation7] sm:$0xff]  ;;  %v278_v16 = vld [vmem:[%s237_s21] sm:$0xf]  ;;  %s901_s21 = sshra.s32 %s459_s7, 4  ;;  %s907_s14 = scalar_lea.hbm %s1216_s3, 8  ;;  %s902_s21 = int_to_ptr.hbm [resolvable:$true] %s901_s21 }
  0x2f   : > { %423 = vmatpush.bf16.msra.mxu1 %v705_v3  ;;  %s903_s12 = scalar_lea.hbm %s902_s21, 4  ;;  %p908_p9 = scmp.lt.s32.totalorder %s902_s21, %s1216_s3 }
  0x30   : > { %p904_p1 = scmp.ne.s32.totalorder %s902_s21, %s903_s12  ;;  %p909_p10 = scmp.lt.s32.totalorder %s907_s14, %s903_s12 }
  0x32   : > { %345 = vmatpush.bf16.msra.mxu0 %v696_v4  ;;  %p905_p3 = pnand %p904_p1, %p1110_p0  ;;  %p910_p12 = por %p909_p10, %p908_p9 }
  0x33   : > { %424 = vmatpush.bf16.msra.mxu1 %v704_v5 }
  0x34   : > { %p906_p8 = pneg %p905_p3 }
  0x36   : > { %346 = vmatpush.bf16.msra.mxu0 %v695_v6  ;;  %p911_p13 = pnand %p910_p12, %p906_p8 }
  0x37   : > { %425 = vmatpush.bf16.msra.mxu1 %v703_v7 }
  0x3a   : > { %347 = vmatpush.bf16.msra.mxu0 %v694_v8 }
  0x3b   : > { %426 = vmatpush.bf16.msra.mxu1 %v702_v9 }
  0x3e   : > { %348 = vmatpush.bf16.msra.mxu0 %v693_v10 }
  0x3f   : > { %427 = vmatpush.bf16.msra.mxu1 %v701_v11 }
  0x42   : > { %349 = vmatpush.bf16.msra.mxu0 %v692_v12 }
  0x43   : > { %428 = vmatpush.bf16.msra.mxu1 %v700_v13 }
  0x46   : > { %350 = vmatpush.bf16.msra.mxu0 %v691_v14 }
  0x47   : > { %429 = vmatpush.bf16.msra.mxu1 %v699_v15 }
  0x49   : > { %351 = vmatmul.bf16.vlgmr.msra.gmra.mxu0 %v278_v16 }
  0x4a   : > { %430 = vmatmul.bf16.vlgmr.msra.gmra.mxu1 %v278_v16 }
  0xc6   : > { %v352_v17 = vpop.f32.mrf.mxu0 }
  0xc7   : > { %v431_v18 = vpop.f32.mrf.mxu1  ;;  %v356_v19 = vpack.c.bf16 %v352_v17, %v352_v17 }
  0xc8   : > { %v435_v20 = vpack.c.bf16 %v431_v18, %v431_v18 }
  0xc9   : > { %357 = vst [vmem:[%s270_s5] sm:$0xf] %v356_v19 }
  0xca   : > { %436 = vst [vmem:[%s277_s8] sm:$0xf] %v435_v20 }
  0xcb   : > { %914 = shalt.err (!%p911_p13)
}
  0xcc   : > { %717 = dma.vmem_to_hbm [thread:$0]  (%p1110_p0), %s457_s6, 64, %s459_s7, %s438_s18  }
  0xcd   : > { %s443_s29 = scalar_lea.sflag [#allocation10], %s1130_s11  ;;  %s929_s30 = sshra.s32 %s1162_s13, 4  ;;  %s930_s30 = int_to_ptr.hbm [resolvable:$true] %s929_s30 }
  0xce   : > { %s931_s5 = scalar_lea.hbm %s930_s30, 4  ;;  %s935_s12 = scalar_lea.hbm %s1217_s4, 8 }
  0xcf   : > { %p932_p2 = scmp.ne.s32.totalorder %s930_s30, %s931_s5  ;;  %p936_p11 = scmp.lt.s32.totalorder %s930_s30, %s1217_s4 }
  0xd0   : > { %p937_p1 = scmp.lt.s32.totalorder %s935_s12, %s931_s5 }
  0xd1   : > { %p933_p4 = pnand %p932_p2, %p1110_p0 }
  0xd2   : > { %p938_p3 = por %p937_p1, %p936_p11 }
  0xd3   : > { %p934_p7 = pneg %p933_p4 }
  0xd5   : > { %p939_p8 = pnand %p938_p3, %p934_p7 }
  0xd7   : > { %942 = shalt.err (!%p939_p8)
}
  0xd8   : > { %718 = dma.vmem_to_hbm [thread:$0]  (%p1110_p0), %s472_s9, 64, %s1162_s13, %s443_s29   ;;  %v354_v21 = vpop.f32.mrf.mxu0  ;;  %v433_v22 = vpop.f32.mrf.mxu1 }
  0xd9 PF: > { %s485_s11 = sand.u32 1, %s985_s15   ;;  %p733_p9 = pnand %p612_p6, %p1117_p5 }
  0xda   : > { %s486_s6 = scalar_lea.sflag [#allocation4], %s485_s11 }
  0xdb   : > { %p734_p10 = pneg %p733_p9 }
  0xdd   : > { %976 = dma.done.wait (%p734_p10), %s486_s6, 64  }
  0xde   : > { %978 = vsyncadd (%p734_p10), %s486_s6, 4294967232  ;;  %s496_s7 = scalar_lea.sflag [#allocation10], %s485_s11 }
  0xdf   : > { %980 = dma.done.wait (%p734_p10), %s496_s7, 64  }
  0xe0   : > { %982 = vsyncadd (%p734_p10), %s496_s7, 4294967232  ;;  %s25_s20 = sadd.s32 1, %s1005_s20   ;;  %s1223_s15 = smov %s989_s16 }
  0xe1   : > { %p22_p0 = scmp.ge.s32.totalorder %s25_s20, 4   ;;  %s1224_s16 = smov %s993_s17 }
  0xe2   : > { %s1225_s17 = smov %s1115_s24  ;;  %s1226_s18 = smov %s1001_s19 }
  0xe3   : > { %s1227_s19 = smov %s1229_s10  ;;  %24 = sbr.rel (!%p22_p0) target bundleno = 9 (0x9), region = 102 }
  0xe8   :  { %502 = vsyncpa [#allocation3], 1 }
  0xe9   :  { %504 = vsyncpa [#allocation3 + $0x1], 1 }
  0xea   :  { %505 = vsyncpa [#allocation6], 1 }
  0xeb   :  { %506 = vsyncpa [#allocation4], 1 }
  0xec   :  { %508 = vsyncpa [#allocation4 + $0x1], 1 }
  0xed   :  { %509 = vsyncpa [#allocation10], 1 }
  0xee   :  { %511 = vsyncpa [#allocation10 + $0x1], 1 }

</bundles_post_ra>
